<compile_context>
chip_gen: v5e
topology: v5e:2x2
jax: 0.10.0
libtpu: 0.0.40
codegen_flags: <defaults>
</compile_context>

<pallas_src>
import functools
import math

import jax
import jax.numpy as jnp
from jax.experimental import pallas as pl
from jax.experimental.pallas import tpu as pltpu


def _round_up(x, m):
    return (x + m - 1) // m * m


# ----------------------------------------------------------------------------- kernel

def gnn_fused_kernel(a_in_ref, a_out_ref, h0_ref,
                     w_e_ref, b_e_ref,
                     w_ih_ref, b_ih_ref,
                     w_hh_ref, b_hh_ref,
                     out_ref, *, steps: int, seq_len: int, hp: int, matmul_dtype):
    """Fused SR-GNN GRU cell(s) for one batch tile.

    Activations are flat (rows, lanes) = (Bt*Sp, Hp), Hp a multiple of 128.
    Gate-stacked weight slabs (built in the wrapper):
        w_e  : (Hp, 2Hp)   cols = [ein | eout]
        w_ih : (2Hp, 3Hp)  rows = [msg_in | msg_out], cols = [reset | update | new]
        w_hh : (Hp, 3Hp)   cols = [reset | update | new]
    Padded lanes of every operand are zero and remain zero through the recurrence.
    """
    rows = h0_ref.shape[0]
    bt = rows // seq_len
    f32 = jnp.float32

    # adjacency tiles (kept f32: tiny, and the aggregation benefits from f32)
    a_in = a_in_ref[...]
    a_out = a_out_ref[...]

    # bias broadcasts hoisted out of the (possibly unrolled) step loop
    b_e = jnp.broadcast_to(b_e_ref[...], (rows, b_e_ref.shape[1]))
    b_ih = jnp.broadcast_to(b_ih_ref[...], (rows, b_ih_ref.shape[1]))
    b_hh = jnp.broadcast_to(b_hh_ref[...], (rows, b_hh_ref.shape[1]))

    def cell(h):                                       # h: (rows, Hp) f32
        hm = h.astype(matmul_dtype)
        # fused edge linears: e = h @ [W_ein^T | W_eout^T] + [b_ein | b_eout]
        e = jnp.dot(hm, w_e_ref[...], preferred_element_type=f32) + b_e
        e3 = e.reshape(bt, seq_len, 2 * hp)            # sublane/lane aligned reshape
        # per-batch adjacency aggregation (f32, 128-aligned lane slices)
        msg_in = jnp.einsum('bij,bjh->bih', a_in, e3[:, :, :hp],
                            preferred_element_type=f32)
        msg_out = jnp.einsum('bij,bjh->bih', a_out, e3[:, :, hp:],
                             preferred_element_type=f32)
        inp = jnp.concatenate([msg_in, msg_out], axis=-1).reshape(rows, 2 * hp)
        # gate-stacked GRU linears (b_iah/b_oah already folded into b_ih)
        gi = jnp.dot(inp.astype(matmul_dtype), w_ih_ref[...],
                     preferred_element_type=f32) + b_ih
        gh = jnp.dot(hm, w_hh_ref[...], preferred_element_type=f32) + b_hh
        i_r, i_i, i_n = gi[:, :hp], gi[:, hp:2 * hp], gi[:, 2 * hp:]
        h_r, h_i, h_n = gh[:, :hp], gh[:, hp:2 * hp], gh[:, 2 * hp:]
        resetgate = jax.nn.sigmoid(i_r + h_r)          # gate math stays f32 (all chips)
        inputgate = jax.nn.sigmoid(i_i + h_i)
        newgate = jnp.tanh(i_n + resetgate * h_n)
        return newgate + inputgate * (h - newgate)

    h = h0_ref[...]
    if steps <= 4:
        for _ in range(steps):                         # small static unroll
            h = cell(h)
    else:
        h = jax.lax.fori_loop(0, steps, lambda _, hh: cell(hh), h)

    out_ref[...] = h


# --------------------------------------------------------------------------- wrapper

def _prepare_gnn_params(p, Hp, matmul_dtype):
    """Gate-stack, pad (H -> Hp lanes per gate) and pre-transpose weights once, in XLA."""
    H = p["w_ein"].shape[0]
    f32 = jnp.float32

    # fused edge weight / bias: cols = [ein | eout]
    w_e = jnp.zeros((Hp, 2 * Hp), f32)
    w_e = w_e.at[:H, 0:H].set(p["w_ein"].T)
    w_e = w_e.at[:H, Hp:Hp + H].set(p["w_eout"].T)
    b_e = jnp.zeros((1, 2 * Hp), f32)
    b_e = b_e.at[:, 0:H].set(p["b_ein"])
    b_e = b_e.at[:, Hp:Hp + H].set(p["b_eout"])

    # gate-stacked GRU weights: rows [in | out] (each padded to Hp),
    # cols [reset | update | new] (each padded to Hp)
    w_ih = jnp.zeros((2 * Hp, 3 * Hp), f32)
    w_hh = jnp.zeros((Hp, 3 * Hp), f32)
    b_ihp = jnp.zeros((1, 3 * Hp), f32)
    b_hhp = jnp.zeros((1, 3 * Hp), f32)
    for g in range(3):
        wg = p["w_ih"][g * H:(g + 1) * H, :]                         # (H, 2H) = [in | out]
        w_ih = w_ih.at[0:H, g * Hp:g * Hp + H].set(wg[:, :H].T)
        w_ih = w_ih.at[Hp:Hp + H, g * Hp:g * Hp + H].set(wg[:, H:].T)
        w_hh = w_hh.at[0:H, g * Hp:g * Hp + H].set(p["w_hh"][g * H:(g + 1) * H, :].T)
        b_ihp = b_ihp.at[:, g * Hp:g * Hp + H].set(p["b_ih"][:, g * H:(g + 1) * H])
        b_hhp = b_hhp.at[:, g * Hp:g * Hp + H].set(p["b_hh"][:, g * H:(g + 1) * H])

    # fold the b_iah / b_oah message biases through W_ih into one effective bias:
    #   ([msg_in|msg_out] + [b_iah|b_oah]) @ W_ih + b_ih
    #     == [msg_in|msg_out] @ W_ih + ([b_iah|b_oah] @ W_ih + b_ih)
    b_io = jnp.zeros((1, 2 * Hp), f32)
    b_io = b_io.at[:, 0:H].set(p["b_iah"])
    b_io = b_io.at[:, Hp:Hp + H].set(p["b_oah"])
    b_ih_eff = b_io @ w_ih + b_ihp

    return dict(w_e=w_e.astype(matmul_dtype), b_e=b_e,
                w_ih=w_ih.astype(matmul_dtype), b_ih=b_ih_eff,
                w_hh=w_hh.astype(matmul_dtype), b_hh=b_hhp)


def _pick_batch_tile(B, fits):
    divisors = [d for d in range(1, B + 1) if B % d == 0 and fits(d)]
    if not divisors:
        return 1
    # prefer >= 2 grid tiles so the "parallel" batch grid can feed both v7x TensorCores
    multi = [d for d in divisors if B // d >= 2]
    return max(multi) if multi else max(divisors)


def gnn_forward_pallas(A, hidden, params, step=1, matmul_dtype=jnp.bfloat16,
                       vmem_limit_bytes=64 * 1024 * 1024):
    """GNN.forward: `step` fused GRU-style cells in one batch-gridded pallas_call."""
    B, S, H = hidden.shape
    Sp = _round_up(S, 8)                       # sublane alignment
    Hp = _round_up(max(H, 128), 128)           # lane-dense hidden dimension

    # split / pad adjacency and hidden once, in XLA (padded rows / lanes are zero)
    a_in = jnp.pad(A[:, :, :S].astype(jnp.float32),
                   ((0, 0), (0, Sp - S), (0, Sp - S)))
    a_out = jnp.pad(A[:, :, S:2 * S].astype(jnp.float32),
                    ((0, 0), (0, Sp - S), (0, Sp - S)))
    h0 = jnp.pad(hidden.astype(jnp.float32),
                 ((0, 0), (0, Sp - S), (0, Hp - H))).reshape(B * Sp, Hp)

    pp = _prepare_gnn_params(params, Hp, matmul_dtype)

    # VMEM-budgeted batch-tile selection (weights + double-buffered batch tiles)
    w_item = jnp.dtype(matmul_dtype).itemsize
    weight_bytes = ((pp["w_e"].size + pp["w_ih"].size + pp["w_hh"].size) * w_item
                    + (pp["b_e"].size + pp["b_ih"].size + pp["b_hh"].size) * 4)

    def fits(bt):
        a_bytes = 2 * bt * Sp * Sp * 4
        h_bytes = 2 * bt * Sp * Hp * 4
        return weight_bytes + 2 * (a_bytes + h_bytes) <= vmem_limit_bytes // 4

    bt = _pick_batch_tile(B, fits)
    rt = bt * Sp
    grid = (B // bt,)

    rows = B * Sp
    flops_step = (2 * rows * Hp * 2 * Hp               # fused edge linear
                  + 2 * 2 * B * Sp * Sp * Hp           # adjacency aggregation
                  + 2 * rows * 2 * Hp * 3 * Hp         # gate-stacked W_ih
                  + 2 * rows * Hp * 3 * Hp)            # gate-stacked W_hh
    cost = pl.CostEstimate(
        flops=int(step * flops_step),
        transcendentals=int(step * 3 * rows * Hp),
        bytes_accessed=int((a_in.size + a_out.size + 2 * h0.size) * 4 + weight_bytes))

    kernel = functools.partial(gnn_fused_kernel, steps=step, seq_len=Sp, hp=Hp,
                               matmul_dtype=matmul_dtype)

    out_flat = pl.pallas_call(
        kernel,
        out_shape=jax.ShapeDtypeStruct((B * Sp, Hp), jnp.float32),
        grid=grid,
        in_specs=[
            pl.BlockSpec((bt, Sp, Sp), lambda b: (b, 0, 0)),        # a_in
            pl.BlockSpec((bt, Sp, Sp), lambda b: (b, 0, 0)),        # a_out
            pl.BlockSpec((rt, Hp), lambda b: (b, 0)),               # h0 (flat, lane-dense)
            pl.BlockSpec((Hp, 2 * Hp), lambda b: (0, 0)),           # w_e   (fetched once)
            pl.BlockSpec((1, 2 * Hp), lambda b: (0, 0)),            # b_e
            pl.BlockSpec((2 * Hp, 3 * Hp), lambda b: (0, 0)),       # w_ih  (gate-stacked)
            pl.BlockSpec((1, 3 * Hp), lambda b: (0, 0)),            # b_ih  (effective)
            pl.BlockSpec((Hp, 3 * Hp), lambda b: (0, 0)),           # w_hh  (gate-stacked)
            pl.BlockSpec((1, 3 * Hp), lambda b: (0, 0)),            # b_hh
        ],
        out_specs=pl.BlockSpec((rt, Hp), lambda b: (b, 0)),
        compiler_params=pltpu.CompilerParams(
            dimension_semantics=("parallel",),
            vmem_limit_bytes=vmem_limit_bytes),
        cost_estimate=cost,
    )(a_in, a_out, h0,
      pp["w_e"], pp["b_e"], pp["w_ih"], pp["b_ih"], pp["w_hh"], pp["b_hh"])

    # un-pad / un-flatten in XLA, not in the kernel
    return out_flat.reshape(B, Sp, Hp)[:, :S, :H]


def session_graph_forward(inputs, A, params, step=1, matmul_dtype=jnp.bfloat16):
    """SessionGraph.forward: embedding lookup + fused GNN kernel."""
    # TODO(synk): fuse the embedding gather into the Pallas path (scalar-prefetched
    # indices + per-row gather DMA) to avoid the HBM round-trip of `hidden` at
    # production n_node / B*S; at demo sizes jnp.take is negligible.
    hidden = jnp.take(params["embedding"], inputs, axis=0)          # (B, S, H)
    return gnn_forward_pallas(A, hidden, params, step=step, matmul_dtype=matmul_dtype)


# TODO(synk): only the default cur_key path (gate_size_mult=3, use_GRU, sigmoid
# reset/update, tanh newgate) is implemented; compute_scores is not part of
# SessionGraph.forward and is therefore not implemented here.


# ----------------------------------------------------------------- pure-JAX reference

def session_graph_forward_ref(inputs, A, p, step=1):
    h = jnp.take(p["embedding"], inputs, axis=0)
    S = A.shape[1]
    H = h.shape[-1]
    for _ in range(step):
        ein = h @ p["w_ein"].T + p["b_ein"]
        eout = h @ p["w_eout"].T + p["b_eout"]
        input_in = jnp.einsum("bij,bjh->bih", A[:, :, :S], ein) + p["b_iah"]
        input_out = jnp.einsum("bij,bjh->bih", A[:, :, S:2 * S], eout) + p["b_oah"]
        inp = jnp.concatenate([input_in, input_out], axis=2)
        gi = inp @ p["w_ih"].T + p["b_ih"]
        gh = h @ p["w_hh"].T + p["b_hh"]
        i_r, i_i, i_n = gi[..., :H], gi[..., H:2 * H], gi[..., 2 * H:]
        h_r, h_i, h_n = gh[..., :H], gh[..., H:2 * H], gh[..., 2 * H:]
        r = jax.nn.sigmoid(i_r + h_r)
        z = jax.nn.sigmoid(i_i + h_i)
        n = jnp.tanh(i_n + r * h_n)
        h = n + z * (h - n)
    return h


def init_params(key, n_node, hidden_size):
    """Deterministic init mirroring SessionGraph.reset_parameters: U(-stdv, stdv)."""
    stdv = 1.0 / math.sqrt(hidden_size)
    H = hidden_size
    shapes = {
        "embedding": (n_node, H),
        "w_ein": (H, H), "b_ein": (1, H),
        "w_eout": (H, H), "b_eout": (1, H),
        "b_iah": (1, H), "b_oah": (1, H),
        "w_ih": (3 * H, 2 * H), "b_ih": (1, 3 * H),
        "w_hh": (3 * H, H), "b_hh": (1, 3 * H),
    }
    params = {}
    for name, shape in shapes.items():
        key, sub = jax.random.split(key)
        params[name] = jax.random.uniform(sub, shape, jnp.float32, -stdv, stdv)
    return params


if __name__ == "__main__":
    B, S, H, N_NODE = 2, 8, 32, 50

    key = jax.random.PRNGKey(0)
    k_par, k_inp, k_adj = jax.random.split(key, 3)

    params = init_params(k_par, N_NODE, H)
    inputs = jax.random.randint(k_inp, (B, S), 0, N_NODE, dtype=jnp.int32)
    A = jax.random.uniform(k_adj, (B, S, 2 * S), jnp.float32)   # [A_in | A_out]

    # exact-semantics check (f32 MXU operands), step=1 (module default) and step=2
    for st in (1, 2):
        out = jax.block_until_ready(
            session_graph_forward(inputs, A, params, step=st, matmul_dtype=jnp.float32))
        ref = session_graph_forward_ref(inputs, A, params, step=st)
        assert out.shape == (B, S, H)
        assert jnp.allclose(out, ref, atol=1e-4, rtol=1e-4), f"f32 mismatch (step={st})"

    # default perf path: bf16 MXU operands, f32 accumulate + f32 gate elementwise
    out_bf = jax.block_until_ready(session_graph_forward(inputs, A, params, step=1))
    ref1 = session_graph_forward_ref(inputs, A, params, step=1)
    assert out_bf.shape == (B, S, H)
    assert jnp.allclose(out_bf, ref1, atol=3e-2, rtol=3e-2), "bf16 mismatch (step=1)"

    print("KERNEL_OK")
</pallas_src>

<mosaic_0001>
module attributes {stable_mosaic.version = 11 : i64} {
  func.func @gnn_fused_kernel(%arg0: i32, %arg1: memref<1x8x8xf32, #tpu.memory_space<vmem>>, %arg2: memref<1x8x8xf32, #tpu.memory_space<vmem>>, %arg3: memref<8x128xf32, #tpu.memory_space<vmem>>, %arg4: memref<128x256xf32, #tpu.memory_space<vmem>>, %arg5: memref<1x256xf32, #tpu.memory_space<vmem>>, %arg6: memref<256x384xf32, #tpu.memory_space<vmem>>, %arg7: memref<1x384xf32, #tpu.memory_space<vmem>>, %arg8: memref<128x384xf32, #tpu.memory_space<vmem>>, %arg9: memref<1x384xf32, #tpu.memory_space<vmem>>, %arg10: memref<8x128xf32, #tpu.memory_space<vmem>>) attributes {dimension_semantics = [#tpu.dimension_semantics<parallel>], iteration_bounds = array<i64: 2>, scalar_prefetch = 0 : i64, scratch_operands = 0 : i64, tpu.core_type = #tpu.core_type<tc>, window_params = [{transform_indices = @transform_0, window_bounds = array<i64: 1, 8, 8>}, {transform_indices = @transform_1, window_bounds = array<i64: 1, 8, 8>}, {transform_indices = @transform_2, window_bounds = array<i64: 8, 128>}, {pipeline_mode = #tpu.pipeline_mode<synchronous>, transform_indices = @transform_3, window_bounds = array<i64: 128, 256>}, {pipeline_mode = #tpu.pipeline_mode<synchronous>, transform_indices = @transform_4, window_bounds = array<i64: 1, 256>}, {pipeline_mode = #tpu.pipeline_mode<synchronous>, transform_indices = @transform_5, window_bounds = array<i64: 256, 384>}, {pipeline_mode = #tpu.pipeline_mode<synchronous>, transform_indices = @transform_6, window_bounds = array<i64: 1, 384>}, {pipeline_mode = #tpu.pipeline_mode<synchronous>, transform_indices = @transform_7, window_bounds = array<i64: 128, 384>}, {pipeline_mode = #tpu.pipeline_mode<synchronous>, transform_indices = @transform_8, window_bounds = array<i64: 1, 384>}, {transform_indices = @transform_9, window_bounds = array<i64: 8, 128>}]} {
    %c0 = arith.constant 0 : index
    %c0_0 = arith.constant 0 : index
    %c0_1 = arith.constant 0 : index
    %0 = vector.load %arg1[%c0, %c0_0, %c0_1] : memref<1x8x8xf32, #tpu.memory_space<vmem>>, vector<1x8x8xf32>
    %c0_2 = arith.constant 0 : index
    %c0_3 = arith.constant 0 : index
    %c0_4 = arith.constant 0 : index
    %1 = vector.load %arg2[%c0_2, %c0_3, %c0_4] : memref<1x8x8xf32, #tpu.memory_space<vmem>>, vector<1x8x8xf32>
    %c0_5 = arith.constant 0 : index
    %c0_6 = arith.constant 0 : index
    %2 = vector.load %arg5[%c0_5, %c0_6] : memref<1x256xf32, #tpu.memory_space<vmem>>, vector<1x256xf32>
    %3 = vector.shape_cast %2 : vector<1x256xf32> to vector<1x256xf32>
    %4 = vector.broadcast %3 : vector<1x256xf32> to vector<8x256xf32>
    %c0_7 = arith.constant 0 : index
    %c0_8 = arith.constant 0 : index
    %5 = vector.load %arg7[%c0_7, %c0_8] : memref<1x384xf32, #tpu.memory_space<vmem>>, vector<1x384xf32>
    %6 = vector.shape_cast %5 : vector<1x384xf32> to vector<1x384xf32>
    %7 = vector.broadcast %6 : vector<1x384xf32> to vector<8x384xf32>
    %c0_9 = arith.constant 0 : index
    %c0_10 = arith.constant 0 : index
    %8 = vector.load %arg9[%c0_9, %c0_10] : memref<1x384xf32, #tpu.memory_space<vmem>>, vector<1x384xf32>
    %9 = vector.shape_cast %8 : vector<1x384xf32> to vector<1x384xf32>
    %10 = vector.broadcast %9 : vector<1x384xf32> to vector<8x384xf32>
    %c0_11 = arith.constant 0 : index
    %c0_12 = arith.constant 0 : index
    %11 = vector.load %arg3[%c0_11, %c0_12] : memref<8x128xf32, #tpu.memory_space<vmem>>, vector<8x128xf32>
    %c0_13 = arith.constant 0 : index
    %c0_14 = arith.constant 0 : index
    %12 = vector.load %arg4[%c0_13, %c0_14] : memref<128x256xf32, #tpu.memory_space<vmem>>, vector<128x256xf32>
    %cst = arith.constant dense<0.000000e+00> : vector<8x256xf32>
    %13 = tpu.matmul %11, %12, %cst {dimension_numbers = #tpu.dot_dimension_numbers<[1], [0], [0], [1], [0, 0, 1, 1], [], []>} : vector<8x128xf32>, vector<128x256xf32>, vector<8x256xf32> -> vector<8x256xf32>
    %14 = arith.addf %13, %4 : vector<8x256xf32>
    %15 = vector.shape_cast %14 : vector<8x256xf32> to vector<1x8x256xf32>
    %16 = vector.extract_strided_slice %15 {offsets = [0, 0, 0], sizes = [1, 8, 128], strides = [1, 1, 1]} : vector<1x8x256xf32> to vector<1x8x128xf32>
    "tpu.trace_start"() <{level = 10 : i32, message = "bij,bjh->bih"}> : () -> ()
    %cst_15 = arith.constant dense<0.000000e+00> : vector<1x8x128xf32>
    %17 = tpu.matmul %0, %16, %cst_15 {dimension_numbers = #tpu.dot_dimension_numbers<[2], [1], [1], [2], [0, 0, 0, 1, 1, 2], [0], [0]>} : vector<1x8x8xf32>, vector<1x8x128xf32>, vector<1x8x128xf32> -> vector<1x8x128xf32>
    "tpu.trace_stop"() : () -> ()
    %18 = vector.extract_strided_slice %15 {offsets = [0, 0, 128], sizes = [1, 8, 128], strides = [1, 1, 1]} : vector<1x8x256xf32> to vector<1x8x128xf32>
    "tpu.trace_start"() <{level = 10 : i32, message = "bij,bjh->bih"}> : () -> ()
    %cst_16 = arith.constant dense<0.000000e+00> : vector<1x8x128xf32>
    %19 = tpu.matmul %1, %18, %cst_16 {dimension_numbers = #tpu.dot_dimension_numbers<[2], [1], [1], [2], [0, 0, 0, 1, 1, 2], [0], [0]>} : vector<1x8x8xf32>, vector<1x8x128xf32>, vector<1x8x128xf32> -> vector<1x8x128xf32>
    "tpu.trace_stop"() : () -> ()
    %20 = tpu.concatenate %17, %19 in 2 : vector<1x8x128xf32>, vector<1x8x128xf32> -> vector<1x8x256xf32>
    %21 = vector.shape_cast %20 : vector<1x8x256xf32> to vector<8x256xf32>
    %c0_17 = arith.constant 0 : index
    %c0_18 = arith.constant 0 : index
    %22 = vector.load %arg6[%c0_17, %c0_18] : memref<256x384xf32, #tpu.memory_space<vmem>>, vector<256x384xf32>
    %cst_19 = arith.constant dense<0.000000e+00> : vector<8x384xf32>
    %23 = tpu.matmul %21, %22, %cst_19 {dimension_numbers = #tpu.dot_dimension_numbers<[1], [0], [0], [1], [0, 0, 1, 1], [], []>} : vector<8x256xf32>, vector<256x384xf32>, vector<8x384xf32> -> vector<8x384xf32>
    %24 = arith.addf %23, %7 : vector<8x384xf32>
    %c0_20 = arith.constant 0 : index
    %c0_21 = arith.constant 0 : index
    %25 = vector.load %arg8[%c0_20, %c0_21] : memref<128x384xf32, #tpu.memory_space<vmem>>, vector<128x384xf32>
    %cst_22 = arith.constant dense<0.000000e+00> : vector<8x384xf32>
    %26 = tpu.matmul %11, %25, %cst_22 {dimension_numbers = #tpu.dot_dimension_numbers<[1], [0], [0], [1], [0, 0, 1, 1], [], []>} : vector<8x128xf32>, vector<128x384xf32>, vector<8x384xf32> -> vector<8x384xf32>
    %27 = arith.addf %26, %10 : vector<8x384xf32>
    %28 = vector.extract_strided_slice %24 {offsets = [0, 0], sizes = [8, 128], strides = [1, 1]} : vector<8x384xf32> to vector<8x128xf32>
    %29 = vector.extract_strided_slice %24 {offsets = [0, 128], sizes = [8, 128], strides = [1, 1]} : vector<8x384xf32> to vector<8x128xf32>
    %30 = vector.extract_strided_slice %24 {offsets = [0, 256], sizes = [8, 128], strides = [1, 1]} : vector<8x384xf32> to vector<8x128xf32>
    %31 = vector.extract_strided_slice %27 {offsets = [0, 0], sizes = [8, 128], strides = [1, 1]} : vector<8x384xf32> to vector<8x128xf32>
    %32 = vector.extract_strided_slice %27 {offsets = [0, 128], sizes = [8, 128], strides = [1, 1]} : vector<8x384xf32> to vector<8x128xf32>
    %33 = vector.extract_strided_slice %27 {offsets = [0, 256], sizes = [8, 128], strides = [1, 1]} : vector<8x384xf32> to vector<8x128xf32>
    %34 = arith.addf %28, %31 : vector<8x128xf32>
    %35 = arith.negf %34 : vector<8x128xf32>
    %36 = math.exp %35 : vector<8x128xf32>
    %cst_23 = arith.constant 1.000000e+00 : f32
    %37 = vector.broadcast %cst_23 : f32 to vector<8x128xf32>
    %38 = arith.addf %37, %36 : vector<8x128xf32>
    %39 = arith.divf %37, %38 : vector<8x128xf32>
    %40 = arith.addf %29, %32 : vector<8x128xf32>
    %41 = arith.negf %40 : vector<8x128xf32>
    %42 = math.exp %41 : vector<8x128xf32>
    %cst_24 = arith.constant 1.000000e+00 : f32
    %43 = vector.broadcast %cst_24 : f32 to vector<8x128xf32>
    %44 = arith.addf %43, %42 : vector<8x128xf32>
    %45 = arith.divf %43, %44 : vector<8x128xf32>
    %46 = arith.mulf %39, %33 : vector<8x128xf32>
    %47 = arith.addf %30, %46 : vector<8x128xf32>
    %48 = math.tanh %47 : vector<8x128xf32>
    %49 = arith.subf %11, %48 : vector<8x128xf32>
    %50 = arith.mulf %45, %49 : vector<8x128xf32>
    %51 = arith.addf %48, %50 : vector<8x128xf32>
    %c0_25 = arith.constant 0 : index
    %c0_26 = arith.constant 0 : index
    %52 = vector.load %arg10[%c0_25, %c0_26] : memref<8x128xf32, #tpu.memory_space<vmem>>, vector<8x128xf32>
    tpu.vector_store %arg10[%c0_25, %c0_26], %51 {strides = array<i32>} : memref<8x128xf32, #tpu.memory_space<vmem>>, vector<8x128xf32>,
    return
  }
  func.func @transform_0(%arg0: i32) -> (i32, i32, i32) {
    %c0_i32 = arith.constant 0 : i32
    %c0_i32_0 = arith.constant 0 : i32
    %c0_i32_1 = arith.constant 0 : i32
    return %arg0, %c0_i32, %c0_i32_0 : i32, i32, i32
  }
  func.func @transform_1(%arg0: i32) -> (i32, i32, i32) {
    %c0_i32 = arith.constant 0 : i32
    %c0_i32_0 = arith.constant 0 : i32
    %c0_i32_1 = arith.constant 0 : i32
    return %arg0, %c0_i32, %c0_i32_0 : i32, i32, i32
  }
  func.func @transform_2(%arg0: i32) -> (i32, i32) {
    %c0_i32 = arith.constant 0 : i32
    %c0_i32_0 = arith.constant 0 : i32
    return %arg0, %c0_i32 : i32, i32
  }
  func.func @transform_3(%arg0: i32) -> (i32, i32) {
    %c0_i32 = arith.constant 0 : i32
    %c0_i32_0 = arith.constant 0 : i32
    %c0_i32_1 = arith.constant 0 : i32
    return %c0_i32, %c0_i32_0 : i32, i32
  }
  func.func @transform_4(%arg0: i32) -> (i32, i32) {
    %c0_i32 = arith.constant 0 : i32
    %c0_i32_0 = arith.constant 0 : i32
    %c0_i32_1 = arith.constant 0 : i32
    return %c0_i32, %c0_i32_0 : i32, i32
  }
  func.func @transform_5(%arg0: i32) -> (i32, i32) {
    %c0_i32 = arith.constant 0 : i32
    %c0_i32_0 = arith.constant 0 : i32
    %c0_i32_1 = arith.constant 0 : i32
    return %c0_i32, %c0_i32_0 : i32, i32
  }
  func.func @transform_6(%arg0: i32) -> (i32, i32) {
    %c0_i32 = arith.constant 0 : i32
    %c0_i32_0 = arith.constant 0 : i32
    %c0_i32_1 = arith.constant 0 : i32
    return %c0_i32, %c0_i32_0 : i32, i32
  }
  func.func @transform_7(%arg0: i32) -> (i32, i32) {
    %c0_i32 = arith.constant 0 : i32
    %c0_i32_0 = arith.constant 0 : i32
    %c0_i32_1 = arith.constant 0 : i32
    return %c0_i32, %c0_i32_0 : i32, i32
  }
  func.func @transform_8(%arg0: i32) -> (i32, i32) {
    %c0_i32 = arith.constant 0 : i32
    %c0_i32_0 = arith.constant 0 : i32
    %c0_i32_1 = arith.constant 0 : i32
    return %c0_i32, %c0_i32_0 : i32, i32
  }
  func.func @transform_9(%arg0: i32) -> (i32, i32) {
    %c0_i32 = arith.constant 0 : i32
    %c0_i32_0 = arith.constant 0 : i32
    return %arg0, %c0_i32 : i32, i32
  }
}

</mosaic_0001>

<bundles_post_ra>
// kernel: tpu_custom_call.1
= control target key start
LH: loop header
LB: loop body
LE: loop exit
PB: predicated region body
PF: predicated region fallthrough
CT: control target
= control target key end

     0   :  { %s1910_s0 = inlined_call_operand.hbm [shape: f32[2,8,8], index: 0, kind: input, shape index: {}]   ;;  %s1911_s1 = inlined_call_operand.hbm [shape: f32[2,8,8], index: 1, kind: input, shape index: {}]   ;;  %s1912_s2 = inlined_call_operand.hbm [shape: f32[16,128], index: 2, kind: input, shape index: {}]   ;;  %s1913_s3 = inlined_call_operand.hbm [shape: f32[128,256], index: 3, kind: input, shape index: {}]   ;;  %s1914_s4 = inlined_call_operand.hbm [shape: f32[1,256], index: 4, kind: input, shape index: {}]   ;;  %s1915_s5 = inlined_call_operand.hbm [shape: f32[256,384], index: 5, kind: input, shape index: {}]   ;;  %s1916_s6 = inlined_call_operand.vmem [shape: f32[1,384], index: 6, kind: input, shape index: {}]   ;;  %s1917_s7 = inlined_call_operand.hbm [shape: f32[128,384], index: 7, kind: input, shape index: {}]   ;;  %s1918_s8 = inlined_call_operand.vmem [shape: f32[1,384], index: 8, kind: input, shape index: {}]   ;;  %s1919_s9 = inlined_call_operand.hbm [shape: f32[16,128], index: 9, kind: output, shape index: {}]  }
   0x1   :  { %1929 = sst [smem:[#allocation25_spill]] %s1911_s1 }
   0x2   :  { %1930 = sst [smem:[#allocation26_spill]] %s1913_s3 }
   0x3   :  { %1931 = sst [smem:[#allocation27_spill]] %s1914_s4 }
   0x4   :  { %1932 = sst [smem:[#allocation28_spill]] %s1915_s5 }
   0x5   :  { %14 = vsyncpa [#allocation3], 0 }
   0x6   :  { %16 = vsyncpa [#allocation3 + $0x1], 0 }
   0x7   :  { %17 = vsyncpa [#allocation6], 0 }
   0x8   :  { %19 = vsyncpa [#allocation6 + $0x1], 0 }
   0x9   :  { %20 = vsyncpa [#allocation9], 0 }
   0xa   :  { %21 = vsyncpa [#allocation12], 0 }
   0xb   :  { %22 = vsyncpa [#allocation4], 0 }
   0xc   :  { %24 = vsyncpa [#allocation4 + $0x1], 0  ;;  %s1660_s30 = smov 0   ;;  %s1662_s10 = smov 0  }
   0xd   :  { %s1664_s11 = smov 0   ;;  %s1666_s12 = smov 0  }
   0xe LB: > { %1933 = sst [smem:[#allocation20_spill]] %s1588_s30  ;;  %s1684_s16 = sadd.s32 4294967295, %s1600_s12   ;;  %s1600_s12 = sphi %s1666_s12, %s1959_s12   ;;  %s1596_s11 = sphi %s1664_s11, %s1963_s11   ;;  %s1592_s10 = sphi %s1662_s10, %s1962_s10   ;;  %s1588_s30 = sphi %s1660_s30, %s1961_s30  }
   0xf   : > { %1934 = sst [smem:[#allocation21_spill]] %s1600_s12  ;;  %p1172_p0 = scmp.ge.s32.totalorder %s1600_s12, 1 }
  0x10   : > { %s1935_s3 = sld [smem:[#allocation26_spill]]  ;;  %p1926_p1 = scmp.eq.s32.totalorder %s1684_s16, 0 }
  0x11   : > { %p265_p2 = scmp.lt.s32.totalorder %s1600_s12, 3  ;;  %s1602_s18 = smov [#allocation8]  }
  0x12   : > { %s278_s19 = sshll.u32 %s1602_s18, 4  ;;  %s1937_s5 = sld [smem:[#allocation28_spill]]  ;;  %s279_s19 = int_to_ptr.vmem [resolvable:$true] %s278_s19 }
  0x13   : > { %p1689_p3 = pnand %p1172_p0, %p265_p2  ;;  %s1603_s24 = smov [#allocation11]  }
  0x14   : > { %s304_s25 = sshll.u32 %s1603_s24, 4  ;;  %s1604_s26 = smov 256   ;;  %s305_s25 = int_to_ptr.vmem [resolvable:$true] %s304_s25 }
  0x15   : > { %p1225_p4 = pneg %p1689_p3  ;;  %s1605_s27 = smov 16  }
  0x16   : > { %s276_s15 = sshll.u32 %s1935_s3, 4  ;;  %s1920_s28 = smov 384   ;;  %s277_s15 = int_to_ptr.hbm [resolvable:$true] %s276_s15 }
  0x17   : > { %p1701_p6 = pnand %p1225_p4, %p1926_p1  ;;  %s1921_s29 = smov 24  }
  0x18   : > { %s302_s22 = sshll.u32 %s1937_s5, 4  ;;  %s1171_s13 = sadd.s32 4294967294, %s1600_s12   ;;  %s303_s22 = int_to_ptr.hbm [resolvable:$true] %s302_s22 }
  0x19   : > { %1228 = dma.hbm_to_vmem [thread:$0]  (!%p1701_p6), %s277_s15, 4096, %s279_s19, [#allocation9], %s1604_s26, %s1604_s26, %s1605_s27  }
  0x1a   : > { %1234 = dma.hbm_to_vmem [thread:$0]  (!%p1701_p6), %s303_s22, 12288, %s305_s25, [#allocation12], %s1920_s28, %s1920_s28, %s1921_s29  }
  0x1b   : > { %s1714_s14 = sadd.s32 1, %s1600_s12   ;;  %s37_s20 = sadd.s32 1, %s1596_s11 }
  0x1c   : > { %1939 = sst [smem:[#allocation22_spill]] %s1714_s14  ;;  %s34_s18 = ssub.s32 %s1600_s12, %s1714_s14 }
  0x1d   : > { %p35_p7 = scmp.eq.s32.totalorder %s34_s18, 0  ;;  %p44_p8 = scmp.ne.s32.totalorder %s1596_s11, %s1592_s10 }
  0x1e   : > { %p45_p9 = scmp.eq.s32.totalorder %s1600_s12, 0  ;;  %p50_p10 = scmp.ne.s32.totalorder %s1592_s10, %s1588_s30 }
  0x1f   : > { %s1725_s15 = scalar_select %p35_p7, %s1596_s11, %s37_s20  }
  0x20   : > { %p46_p11 = por %p45_p9, %p44_p8  ;;  %p1729_p12 = por %p1926_p1, %p50_p10 }
  0x21   : > { %1940 = sst [smem:[#allocation23_spill]] %s1725_s15  ;;  %p252_p13 = scmp.eq.s32.totalorder %s1684_s16, 1 }
  0x22   : > { %p258_p0 = scmp.eq.s32.totalorder %s1171_s13, 1  ;;  %p1256_p2 = scmp.lt.s32.totalorder %s1600_s12, 2 }
  0x23   : > { %s1922_s21 = sand.u32 1, %s1596_s11   ;;  %p1736_p4 = por %p252_p13, %p44_p8 }
  0x24   : > { %p1740_p5 = por %p258_p0, %p50_p10  ;;  %s1746_s25 = sshll.u32 %s1922_s21, 3 }
  0x25   : > { %s1749_s26 = sshll.u32 %s1600_s12, 3  ;;  %p1751_p7 = pnand %p1256_p2, %p46_p11 }
  0x26   : > { %s1943_s24 = scalar_select %p1740_p5, 1, 0 }
  0x27   : > { %s357_s13 = sand.u32 1, %s1600_s12   ;;  %s1946_s1 = sld [smem:[#allocation25_spill]] }
  0x28   : > { %1944 = sst [smem:[#allocation24_spill]] %s1943_s24  ;;  %s361_s3 = scalar_lea.vmem [#allocation5], %s1746_s25 }
  0x29   : > { %s369_s5 = sshll.u32 %s361_s3, 4  ;;  %s1761_s21 = scalar_lea.sflag [#allocation6], %s357_s13  ;;  %s370_s5 = int_to_ptr.vmem [resolvable:$true] %s369_s5 }
  0x2a   : > { %p1376_p9 = pneg %p1751_p7 }
  0x2d   : > { %s365_s28 = scalar_lea.hbm %s1946_s1, %s1749_s26 }
  0x2e   : > { %s367_s29 = sshll.u32 %s365_s28, 4  ;;  %s1379_s28 = scalar_lea.hbm %s1946_s1, 16  ;;  %s368_s29 = int_to_ptr.hbm [resolvable:$true] %s367_s29 }
  0x2f   : > { %s1372_s15 = sshra.s32 %s368_s29, 4  ;;  %s1373_s15 = int_to_ptr.hbm [resolvable:$true] %s1372_s15 }
  0x30   : > { %s1374_s14 = scalar_lea.hbm %s1373_s15, 8  ;;  %p1380_p13 = scmp.lt.s32.totalorder %s1373_s15, %s1946_s1 }
  0x31   : > { %p1375_p8 = scmp.ne.s32.totalorder %s1373_s15, %s1374_s14  ;;  %p1381_p0 = scmp.lt.s32.totalorder %s1379_s28, %s1374_s14 }
  0x33   : > { %p1377_p10 = pnand %p1376_p9, %p1375_p8  ;;  %p1382_p2 = por %p1381_p0, %p1380_p13 }
  0x35   : > { %p1378_p11 = pneg %p1377_p10 }
  0x37   : > { %p1383_p1 = pnand %p1382_p2, %p1378_p11 }
  0x39   : > { %1386 = shalt.err (!%p1383_p1)
}
  0x3a   : > { %1244 = dma.hbm_to_vmem [thread:$0]  (!%p1751_p7), %s368_s29, 128, %s370_s5, %s1761_s21  }
  0x3b   : > { %s1947_s4 = sld [smem:[#allocation27_spill]]  ;;  %s1608_s18 = smov [#allocation10]  }
  0x3c   : > { %s293_s15 = sshll.u32 %s1608_s18, 4  ;;  %s319_s20 = sshll.u32 %s1917_s7, 4  ;;  %s294_s15 = int_to_ptr.vmem [resolvable:$true] %s293_s15  ;;  %s320_s20 = int_to_ptr.hbm [resolvable:$true] %s319_s20 }
  0x3d   : > { %s1609_s3 = smov [#allocation13]   ;;  %s1948_s5 = smov 24  }
  0x3e   : > { %s321_s1 = sshll.u32 %s1609_s3, 4  ;;  %s1949_s29 = smov 384   ;;  %s322_s1 = int_to_ptr.vmem [resolvable:$true] %s321_s1 }
  0x3f   : > { %1237 = dma.hbm_to_vmem [thread:$0]  (!%p1701_p6), %s320_s20, 6144, %s322_s1, [#allocation12], %s1949_s29, %s1949_s29, %s1948_s5  }
  0x40   : > { %s346_s18 = scalar_lea.hbm %s1910_s0, %s1749_s26  ;;  %s1469_s20 = scalar_lea.hbm %s1910_s0, 16 }
  0x41   : > { %s291_s12 = sshll.u32 %s1947_s4, 4  ;;  %s342_s4 = scalar_lea.vmem [#allocation2], %s1746_s25  ;;  %s292_s12 = int_to_ptr.hbm [resolvable:$true] %s291_s12 }
  0x42   : > { %1231 = dma.hbm_to_vmem [thread:$0]  (!%p1701_p6), %s292_s12, 32, %s294_s15, [#allocation9]  }
  0x43   : > { %s350_s30 = sshll.u32 %s342_s4, 4  ;;  %s348_s14 = sshll.u32 %s346_s18, 4  ;;  %s351_s30 = int_to_ptr.vmem [resolvable:$true] %s350_s30  ;;  %s349_s14 = int_to_ptr.hbm [resolvable:$true] %s348_s14 }
  0x44   : > { %s1950_s12 = sand.u32 1, %s1596_s11   ;;  %s1462_s28 = sshra.s32 %s349_s14, 4  ;;  %s1463_s28 = int_to_ptr.hbm [resolvable:$true] %s1462_s28 }
  0x45   : > { %s339_s15 = scalar_lea.sflag [#allocation3], %s1950_s12  ;;  %s1464_s3 = scalar_lea.hbm %s1463_s28, 8 }
  0x46   : > { %p1465_p1 = scmp.ne.s32.totalorder %s1463_s28, %s1464_s3  ;;  %p1470_p6 = scmp.lt.s32.totalorder %s1463_s28, %s1910_s0 }
  0x47   : > { %p1471_p11 = scmp.lt.s32.totalorder %s1469_s20, %s1464_s3 }
  0x48   : > { %p1467_p8 = pnand %p1465_p1, %p1376_p9 }
  0x49   : > { %p1472_p13 = por %p1471_p11, %p1470_p6 }
  0x4a   : > { %p1468_p10 = pneg %p1467_p8 }
  0x4c   : > { %p1473_p0 = pnand %p1472_p13, %p1468_p10 }
  0x4e   : > { %1476 = shalt.err (!%p1473_p0)
}
  0x4f   : > { %1241 = dma.hbm_to_vmem [thread:$0]  (!%p1751_p7), %s349_s14, 128, %s351_s30, %s339_s15  }
  0x50   : > { %s384_s13 = scalar_lea.hbm %s1912_s2, %s1749_s26  ;;  %s380_s18 = scalar_lea.vmem [#allocation7], %s1746_s25 }
  0x51   : > { %s388_s12 = sshll.u32 %s380_s18, 4  ;;  %s386_s1 = sshll.u32 %s384_s13, 4  ;;  %s389_s12 = int_to_ptr.vmem [resolvable:$true] %s388_s12  ;;  %s387_s1 = int_to_ptr.hbm [resolvable:$true] %s386_s1 }
  0x52   : > { %s1492_s28 = sshra.s32 %s387_s1, 4  ;;  %s1499_s30 = scalar_lea.hbm %s1912_s2, 16  ;;  %s1493_s28 = int_to_ptr.hbm [resolvable:$true] %s1492_s28 }
  0x53   : > { %s1494_s3 = scalar_lea.hbm %s1493_s28, 8  ;;  %p1500_p10 = scmp.lt.s32.totalorder %s1493_s28, %s1912_s2 }
  0x54   : > { %p1495_p2 = scmp.ne.s32.totalorder %s1493_s28, %s1494_s3  ;;  %p1501_p6 = scmp.lt.s32.totalorder %s1499_s30, %s1494_s3 }
  0x56   : > { %p1497_p1 = pnand %p1495_p2, %p1376_p9  ;;  %p1502_p11 = por %p1501_p6, %p1500_p10 }
  0x58   : > { %p1498_p8 = pneg %p1497_p1 }
  0x5a   : > { %p1503_p13 = pnand %p1502_p11, %p1498_p8 }
  0x5c   : > { %1506 = shalt.err (!%p1503_p13)
}
  0x5d   : > { %1247 = dma.hbm_to_vmem [thread:$0]  (!%p1751_p7), %s387_s1, 128, %s389_s12, %s1761_s21  }
  0x5e   : > { %397 = sbr.rel (%p1689_p3) target bundleno = 594 (0x252), region = 56  ;;  %s1828_s25 = sand.u32 (!%p1689_p3), 1, %s1592_s10  }
  0x5f   : > { %s1831_s26 = sshll.u32 (!%p1689_p3), %s1828_s25, 3  ;;  %s400_s5 = scalar_lea.sflag (!%p1689_p3), [#allocation3], %s1828_s25 }
  0x60   : > { %s403_s29 = scalar_lea.vmem (!%p1689_p3), [#allocation2], %s1831_s26 }
  0x63   : > { %1567 = dma.done.wait (%p1729_p12), %s400_s5, 128  }
  0x64   : > { %1569 = vsyncadd (%p1729_p12), %s400_s5, 4294967168  ;;  %s409_s17 = sand.u32 1, %s1684_s16   ;;  %s413_s27 = scalar_lea.vmem [#allocation5], %s1831_s26 }
  0x65   : > { %s410_s21 = scalar_lea.sflag [#allocation6], %s409_s17 }
  0x66   : > { %1571 = dma.done.wait (%p1729_p12), %s410_s21, 256  }
  0x67   : > { %1573 = vsyncadd (%p1729_p12), %s410_s21, 4294967040  ;;  %s423_s4 = scalar_lea.vmem [#allocation7], %s1831_s26  ;;  %p1951_p3 = scmp.eq.s32.totalorder %s1684_s16, 0 }
  0x69   : > { %1575 = dma.done.wait (%p1951_p3), [#allocation9], 4128   ;;  %p1952_p7 = pmov %p1951_p3 }
  0x6a   : > { %p1953_p9 = pmov %p1951_p3 }
  0x6b   : > { %1577 = vsyncadd (%p1952_p7), [#allocation9], 4294963168 }
  0x6c   : > { %1579 = dma.done.wait (%p1953_p9), [#allocation12], 18432   ;;  %p1954_p0 = pmov %p1951_p3 }
  0x6d   : > { %v544_v0 = vld [vmem:[#allocation8 + $0xf0] sm:$0xff]  ;;  %v545_v1 = vld [vmem:[#allocation8 + $0xf8] sm:$0xff]  ;;  %v542_v2 = vld [vmem:[#allocation8 + $0xe0] sm:$0xff]  ;;  %vm586_vm0 = vcmask 64512   ;;  %s1198_s12 = sshll.u32 %s1684_s16, 3  ;;  %s488_s23 = scalar_lea.vmem [#allocation14], %s1831_s26 }
  0x6e   : > { %1581 = vsyncadd (%p1954_p0), [#allocation12], 4294948864  ;;  %546 = vmatpush.msra.mxu0 %v544_v0  ;;  %566 = vmatpush.msra.mxu1 %v545_v1  ;;  %v543_v3 = vld [vmem:[#allocation8 + $0xe8] sm:$0xff]  ;;  %v540_v4 = vld [vmem:[#allocation8 + $0xd0] sm:$0xff]  ;;  %s1015_s3 = scalar_lea.hbm %s1919_s9, %s1198_s12  ;;  %s1017_s20 = sshll.u32 %s488_s23, 4  ;;  %s1018_s20 = int_to_ptr.vmem [resolvable:$true] %s1017_s20 }
  0x6f   : > { %v541_v5 = vld [vmem:[#allocation8 + $0xd8] sm:$0xff]  ;;  %v538_v6 = vld [vmem:[#allocation8 + $0xc0] sm:$0xff]  ;;  %v539_v7 = vld [vmem:[#allocation8 + $0xc8] sm:$0xff]  ;;  %s1019_s30 = sshll.u32 %s1015_s3, 4  ;;  %s1005_s16 = scalar_lea.sflag [#allocation4], %s1828_s25  ;;  %s1020_s30 = int_to_ptr.hbm [resolvable:$true] %s1019_s30 }
  0x70   : > { %547 = vmatpush.msra.mxu0 %v542_v2  ;;  %567 = vmatpush.msra.mxu1 %v543_v3  ;;  %v536_v8 = vld [vmem:[#allocation8 + $0xb0] sm:$0xff]  ;;  %v537_v9 = vld [vmem:[#allocation8 + $0xb8] sm:$0xff]  ;;  %v534_v10 = vld [vmem:[#allocation8 + $0xa0] sm:$0xff]  ;;  %s1536_s14 = sshra.s32 %s1020_s30, 4  ;;  %s1542_s17 = scalar_lea.hbm %s1919_s9, 16  ;;  %s1537_s14 = int_to_ptr.hbm [resolvable:$true] %s1536_s14 }
  0x71   : > { %v535_v11 = vld [vmem:[#allocation8 + $0xa8] sm:$0xff]  ;;  %v532_v12 = vld [vmem:[#allocation8 + $0x90] sm:$0xff]  ;;  %v533_v13 = vld [vmem:[#allocation8 + $0x98] sm:$0xff]  ;;  %s1538_s15 = scalar_lea.hbm %s1537_s14, 8  ;;  %p1543_p8 = scmp.lt.s32.totalorder %s1537_s14, %s1919_s9 }
  0x72   : > { %548 = vmatpush.msra.mxu0 %v540_v4  ;;  %568 = vmatpush.msra.mxu1 %v541_v5  ;;  %v530_v14 = vld [vmem:[#allocation8 + $0x80] sm:$0xff]  ;;  %v531_v15 = vld [vmem:[#allocation8 + $0x88] sm:$0xff]  ;;  %v528_v16 = vld [vmem:[#allocation8 + $0x70] sm:$0xff]  ;;  %p1539_p12 = scmp.ne.s32.totalorder %s1537_s14, %s1538_s15  ;;  %p1544_p10 = scmp.lt.s32.totalorder %s1542_s17, %s1538_s15 }
  0x73   : > { %v529_v17 = vld [vmem:[#allocation8 + $0x78] sm:$0xff]  ;;  %v526_v18 = vld [vmem:[#allocation8 + $0x60] sm:$0xff]  ;;  %v527_v19 = vld [vmem:[#allocation8 + $0x68] sm:$0xff] }
  0x74   : > { %549 = vmatpush.msra.mxu0 %v538_v6  ;;  %569 = vmatpush.msra.mxu1 %v539_v7  ;;  %v524_v20 = vld [vmem:[#allocation8 + $0x50] sm:$0xff]  ;;  %v525_v21 = vld [vmem:[#allocation8 + $0x58] sm:$0xff]  ;;  %v522_v22 = vld [vmem:[#allocation8 + $0x40] sm:$0xff]  ;;  %p1540_p2 = pnand %p1539_p12, %p1736_p4  ;;  %p1545_p6 = por %p1544_p10, %p1543_p8 }
  0x75   : > { %v523_v23 = vld [vmem:[#allocation8 + $0x48] sm:$0xff]  ;;  %v520_v24 = vld [vmem:[#allocation8 + $0x30] sm:$0xff]  ;;  %v521_v25 = vld [vmem:[#allocation8 + $0x38] sm:$0xff] }
  0x76   : > { %550 = vmatpush.msra.mxu0 %v536_v8  ;;  %570 = vmatpush.msra.mxu1 %v537_v9  ;;  %v518_v26 = vld [vmem:[#allocation8 + $0x20] sm:$0xff]  ;;  %v519_v27 = vld [vmem:[#allocation8 + $0x28] sm:$0xff]  ;;  %v516_v28 = vld [vmem:[#allocation8 + $0x10] sm:$0xff]  ;;  %p1541_p1 = pneg %p1540_p2 }
  0x77   : > { %v517_v29 = vld [vmem:[#allocation8 + $0x18] sm:$0xff]  ;;  %v514_v30 = vld [vmem:[#allocation8] sm:$0xff]  ;;  %v515_v31 = vld [vmem:[#allocation8 + $0x8] sm:$0xff] }
  0x78   : > { %551 = vmatpush.msra.mxu0 %v534_v10  ;;  %571 = vmatpush.msra.mxu1 %v535_v11  ;;  %v1856_v32 = vld [vmem:[%s423_s4] sm:$0xff]  ;;  %v673_v39 = vld [vmem:[#allocation11 + $0x140] sm:$0xff]  ;;  %v491_v56 = vld [vmem:[#allocation10] sm:$0x3]  ;;  %p1546_p11 = pnand %p1545_p6, %p1541_p1 }
  0x79   : > { %v678_v33 = vld [vmem:[#allocation11 + $0x168] sm:$0xff]  ;;  %v675_v34 = vld [vmem:[#allocation11 + $0x150] sm:$0xff]  ;;  %v672_v36 = vld [vmem:[#allocation11 + $0x138] sm:$0xff]  ;;  %v494_v62 = vperm.slane %v491_v56, 1  ;;  %v493_v63 = vperm.slane %v491_v56, 0 }
  0x7a   : > { %552 = vmatpush.msra.mxu0 %v532_v12  ;;  %572 = vmatpush.msra.mxu1 %v533_v13  ;;  %v679_v35 = vld [vmem:[#allocation11 + $0x170] sm:$0xff]  ;;  %v676_v37 = vld [vmem:[#allocation11 + $0x158] sm:$0xff]  ;;  %v669_v40 = vld [vmem:[#allocation11 + $0x120] sm:$0xff] }
  0x7b   : > { %729 = vmatpush.msra.mxu2 %v678_v33  ;;  %v727_v38 = vld [vmem:[#allocation11 + $0x2f0] sm:$0xff]  ;;  %v724_v41 = vld [vmem:[#allocation11 + $0x2d8] sm:$0xff]  ;;  %v670_v42 = vld [vmem:[#allocation11 + $0x128] sm:$0xff] }
  0x7c   : > { %553 = vmatpush.msra.mxu0 %v530_v14  ;;  %573 = vmatpush.msra.mxu1 %v531_v15  ;;  %v721_v43 = vld [vmem:[#allocation11 + $0x2c0] sm:$0xff]  ;;  %v666_v44 = vld [vmem:[#allocation11 + $0x108] sm:$0xff]  ;;  %v667_v46 = vld [vmem:[#allocation11 + $0x110] sm:$0xff] }
  0x7d   : > { %730 = vmatpush.msra.mxu2 %v675_v34  ;;  %v718_v45 = vld [vmem:[#allocation11 + $0x2a8] sm:$0xff]  ;;  %v663_v47 = vld [vmem:[#allocation11 + $0xf0] sm:$0xff]  ;;  %v664_v49 = vld [vmem:[#allocation11 + $0xf8] sm:$0xff] }
  0x7e   : > { %554 = vmatpush.msra.mxu0 %v528_v16  ;;  %574 = vmatpush.msra.mxu1 %v529_v17  ;;  %v715_v48 = vld [vmem:[#allocation11 + $0x290] sm:$0xff]  ;;  %v660_v50 = vld [vmem:[#allocation11 + $0xd8] sm:$0xff]  ;;  %v661_v52 = vld [vmem:[#allocation11 + $0xe0] sm:$0xff] }
  0x7f   : > { %731 = vmatpush.msra.mxu2 %v672_v36  ;;  %v712_v51 = vld [vmem:[#allocation11 + $0x278] sm:$0xff]  ;;  %v657_v53 = vld [vmem:[#allocation11 + $0xc0] sm:$0xff]  ;;  %v658_v55 = vld [vmem:[#allocation11 + $0xc8] sm:$0xff] }
  0x80   : > { %555 = vmatpush.msra.mxu0 %v526_v18  ;;  %575 = vmatpush.msra.mxu1 %v527_v19  ;;  %v709_v54 = vld [vmem:[#allocation11 + $0x260] sm:$0xff]  ;;  %v654_v57 = vld [vmem:[#allocation11 + $0xa8] sm:$0xff]  ;;  %v655_v59 = vld [vmem:[#allocation11 + $0xb0] sm:$0xff] }
  0x81   : > { %732 = vmatpush.msra.mxu2 %v669_v40  ;;  %v706_v58 = vld [vmem:[#allocation11 + $0x248] sm:$0xff]  ;;  %v651_v60 = vld [vmem:[#allocation11 + $0x90] sm:$0xff]  ;;  %v652_v0 = vld [vmem:[#allocation11 + $0x98] sm:$0xff] }
  0x82   : > { %556 = vmatpush.msra.mxu0 %v524_v20  ;;  %576 = vmatpush.msra.mxu1 %v525_v21  ;;  %v703_v61 = vld [vmem:[#allocation11 + $0x230] sm:$0xff]  ;;  %v648_v1 = vld [vmem:[#allocation11 + $0x78] sm:$0xff]  ;;  %v649_v3 = vld [vmem:[#allocation11 + $0x80] sm:$0xff] }
  0x83   : > { %733 = vmatpush.msra.mxu2 %v666_v44  ;;  %v700_v2 = vld [vmem:[#allocation11 + $0x218] sm:$0xff]  ;;  %v645_v6 = vld [vmem:[#allocation11 + $0x60] sm:$0xff]  ;;  %v646_v10 = vld [vmem:[#allocation11 + $0x68] sm:$0xff] }
  0x84   : > { %557 = vmatpush.msra.mxu0 %v522_v22  ;;  %577 = vmatpush.msra.mxu1 %v523_v23  ;;  %v489_v9 = vld [vmem:[%s403_s29] sm:$0xff]  ;;  %v697_v13 = vld [vmem:[#allocation11 + $0x200] sm:$0xff] }
  0x85   : > { %734 = vmatpush.msra.mxu2 %v663_v47  ;;  %v642_v11 = vld [vmem:[#allocation11 + $0x48] sm:$0xff]  ;;  %v639_v14 = vld [vmem:[#allocation11 + $0x30] sm:$0xff]  ;;  %v636_v18 = vld [vmem:[#allocation11 + $0x18] sm:$0xff] }
  0x86   : > { %558 = vmatpush.msra.mxu0 %v520_v24  ;;  %578 = vmatpush.msra.mxu1 %v521_v25  ;;  %v726_v12 = vld [vmem:[#allocation11 + $0x2e8] sm:$0xff]  ;;  %v643_v15 = vld [vmem:[#allocation11 + $0x50] sm:$0xff]  ;;  %v640_v19 = vld [vmem:[#allocation11 + $0x38] sm:$0xff] }
  0x87   : > { %735 = vmatpush.msra.mxu2 %v660_v50  ;;  %v723_v16 = vld [vmem:[#allocation11 + $0x2d0] sm:$0xff]  ;;  %v694_v17 = vld [vmem:[#allocation11 + $0x1e8] sm:$0xff]  ;;  %v720_v20 = vld [vmem:[#allocation11 + $0x2b8] sm:$0xff] }
  0x88   : > { %559 = vmatpush.msra.mxu0 %v518_v26  ;;  %579 = vmatpush.msra.mxu1 %v519_v27  ;;  %v691_v21 = vld [vmem:[#allocation11 + $0x1d0] sm:$0xff]  ;;  %v633_v22 = vld [vmem:[#allocation11] sm:$0xff]  ;;  %v680_v25 = vld [vmem:[#allocation11 + $0x178] sm:$0xff] }
  0x89   : > { %736 = vmatpush.msra.mxu2 %v657_v53  ;;  %v637_v23 = vld [vmem:[#allocation11 + $0x20] sm:$0xff]  ;;  %v688_v27 = vld [vmem:[#allocation11 + $0x1b8] sm:$0xff]  ;;  %v674_v33 = vld [vmem:[#allocation11 + $0x148] sm:$0xff] }
  0x8a   : > { %560 = vmatpush.msra.mxu0 %v516_v28  ;;  %580 = vmatpush.msra.mxu1 %v517_v29  ;;  %v490_v24 = vld [vmem:[%s413_s27] sm:$0xff]  ;;  %v895_v40 = vld [vmem:[#allocation13 + $0x170] sm:$0xff] }
  0x8b   : > { %737 = vmatpush.msra.mxu2 %v654_v57  ;;  %v717_v26 = vld [vmem:[#allocation11 + $0x2a0] sm:$0xff]  ;;  %v634_v29 = vld [vmem:[#allocation11 + $0x8] sm:$0xff]  ;;  %v892_v44 = vld [vmem:[#allocation13 + $0x158] sm:$0xff] }
  0x8c   : > { %561 = vmatpush.msra.mxu0 %v514_v30  ;;  %581 = vmatpush.msra.mxu1 %v515_v31  ;;  %v677_v28 = vld [vmem:[#allocation11 + $0x160] sm:$0xff]  ;;  %v714_v30 = vld [vmem:[#allocation11 + $0x288] sm:$0xff]  ;;  %v659_v53 = vld [vmem:[#allocation11 + $0xd0] sm:$0xff] }
  0x8d   : > { %562 = vmatmul.f32.vlgmr.msra.gmra.mxu0 %v1856_v32  ;;  %582 = vmatmul.f32.vlgmr.msra.gmra.mxu1 %v1856_v32  ;;  %v685_v31 = vld [vmem:[#allocation11 + $0x1a0] sm:$0xff]  ;;  %v894_v34 = vld [vmem:[#allocation13 + $0x168] sm:$0xff]  ;;  %v883_v56 = vld [vmem:[#allocation13 + $0x110] sm:$0xff] }
  0x8e   : > { %769 = vmatpush.msrb.mxu0 %v679_v35  ;;  %789 = vmatpush.msrb.mxu1 %v727_v38  ;;  %v711_v35 = vld [vmem:[#allocation11 + $0x270] sm:$0xff]  ;;  %v682_v36 = vld [vmem:[#allocation11 + $0x188] sm:$0xff]  ;;  %v656_v57 = vld [vmem:[#allocation11 + $0xb8] sm:$0xff] }
  0x8f   : > { %738 = vmatpush.msra.mxu2 %v651_v60  ;;  %v891_v38 = vld [vmem:[#allocation13 + $0x150] sm:$0xff]  ;;  %v702_v47 = vld [vmem:[#allocation11 + $0x228] sm:$0xff]  ;;  %v880_v60 = vld [vmem:[#allocation13 + $0xf8] sm:$0xff] }
  0x90   : > { %770 = vmatpush.msrb.mxu0 %v676_v37  ;;  %790 = vmatpush.msrb.mxu1 %v724_v41  ;;  %v671_v37 = vld [vmem:[#allocation11 + $0x130] sm:$0xff]  ;;  %v668_v41 = vld [vmem:[#allocation11 + $0x118] sm:$0xff]  ;;  %v882_v50 = vld [vmem:[#allocation13 + $0x108] sm:$0xff] }
  0x91   : > { %739 = vmatpush.msra.mxu2 %v648_v1  ;;  %v650_v1 = vld [vmem:[#allocation11 + $0x88] sm:$0xff] }
  0x92   : > { %771 = vmatpush.msrb.mxu0 %v673_v39  ;;  %791 = vmatpush.msrb.mxu1 %v721_v43  ;;  %v708_v39 = vld [vmem:[#allocation11 + $0x258] sm:$0xff]  ;;  %v705_v43 = vld [vmem:[#allocation11 + $0x240] sm:$0xff] }
  0x93   : > { %740 = vmatpush.msra.mxu2 %v645_v6  ;;  %v728_v6 = vld [vmem:[#allocation11 + $0x2f8] sm:$0xff] }
  0x94   : > { %772 = vmatpush.msrb.mxu0 %v670_v42  ;;  %792 = vmatpush.msrb.mxu1 %v718_v45  ;;  %v888_v42 = vld [vmem:[#allocation13 + $0x138] sm:$0xff]  ;;  %v665_v45 = vld [vmem:[#allocation11 + $0x100] sm:$0xff] }
  0x95   : > { %741 = vmatpush.msra.mxu2 %v642_v11  ;;  %v713_v11 = vld [vmem:[#allocation11 + $0x280] sm:$0xff] }
  0x96   : > { %773 = vmatpush.msrb.mxu0 %v667_v46  ;;  %793 = vmatpush.msrb.mxu1 %v715_v48  ;;  %v885_v46 = vld [vmem:[#allocation13 + $0x120] sm:$0xff] }
  0x97   : > { %742 = vmatpush.msra.mxu2 %v639_v14  ;;  %v889_v48 = vld [vmem:[#allocation13 + $0x140] sm:$0xff]  ;;  %v870_v14 = vld [vmem:[#allocation13 + $0xa8] sm:$0xff] }
  0x98   : > { %774 = vmatpush.msrb.mxu0 %v664_v49  ;;  %794 = vmatpush.msrb.mxu1 %v712_v51  ;;  %v662_v49 = vld [vmem:[#allocation11 + $0xe8] sm:$0xff]  ;;  %v699_v51 = vld [vmem:[#allocation11 + $0x210] sm:$0xff] }
  0x99   : > { %743 = vmatpush.msra.mxu2 %v636_v18  ;;  %v867_v18 = vld [vmem:[#allocation13 + $0x90] sm:$0xff] }
  0x9a   : > { %775 = vmatpush.msrb.mxu0 %v661_v52  ;;  %795 = vmatpush.msrb.mxu1 %v709_v54  ;;  %v886_v52 = vld [vmem:[#allocation13 + $0x128] sm:$0xff]  ;;  %v879_v54 = vld [vmem:[#allocation13 + $0xf0] sm:$0xff] }
  0x9b   : > { %744 = vmatpush.msra.mxu2 %v633_v22  ;;  %v864_v22 = vld [vmem:[#allocation13 + $0x78] sm:$0xff] }
  0x9c   : > { %776 = vmatpush.msrb.mxu0 %v658_v55  ;;  %796 = vmatpush.msrb.mxu1 %v706_v58  ;;  %v696_v55 = vld [vmem:[#allocation11 + $0x1f8] sm:$0xff] }
  0x9d   : > { %809 = vmatpush.msrb.mxu2 %v680_v25  ;;  %v876_v58 = vld [vmem:[#allocation13 + $0xd8] sm:$0xff]  ;;  %v698_v25 = vld [vmem:[#allocation11 + $0x208] sm:$0xff] }
  0x9e   : > { %777 = vmatpush.msrb.mxu0 %v655_v59  ;;  %797 = vmatpush.msrb.mxu1 %v703_v61  ;;  %v693_v59 = vld [vmem:[#allocation11 + $0x1e0] sm:$0xff] }
  0x9f   : > { %810 = vmatpush.msrb.mxu2 %v677_v28  ;;  %v653_v61 = vld [vmem:[#allocation11 + $0xa0] sm:$0xff]  ;;  %v635_v28 = vld [vmem:[#allocation11 + $0x10] sm:$0xff] }
  0xa0   : > { %778 = vmatpush.msrb.mxu0 %v652_v0  ;;  %798 = vmatpush.msrb.mxu1 %v700_v2  ;;  %v877_v0 = vld [vmem:[#allocation13 + $0xe0] sm:$0xff]  ;;  %v687_v2 = vld [vmem:[#allocation11 + $0x1b0] sm:$0xff] }
  0xa1   : > { %811 = vmatpush.msrb.mxu2 %v674_v33  ;;  %v692_v33 = vld [vmem:[#allocation11 + $0x1d8] sm:$0xff] }
  0xa2   : > { %779 = vmatpush.msrb.mxu0 %v649_v3  ;;  %799 = vmatpush.msrb.mxu1 %v697_v13  ;;  %v647_v3 = vld [vmem:[#allocation11 + $0x70] sm:$0xff] }
  0xa3   : > { %812 = vmatpush.msrb.mxu2 %v671_v37  ;;  %v707_v13 = vld [vmem:[#allocation11 + $0x250] sm:$0xff]  ;;  %v852_v37 = vld [vmem:[#allocation13 + $0x18] sm:$0xff] }
  0xa4   : > { %780 = vmatpush.msrb.mxu0 %v646_v10  ;;  %800 = vmatpush.msrb.mxu1 %v694_v17  ;;  %v716_v10 = vld [vmem:[#allocation11 + $0x298] sm:$0xff] }
  0xa5   : > { %813 = vmatpush.msrb.mxu2 %v668_v41  ;;  %v704_v17 = vld [vmem:[#allocation11 + $0x238] sm:$0xff]  ;;  %v853_v41 = vld [vmem:[#allocation13 + $0x20] sm:$0xff] }
  0xa6   : > { %781 = vmatpush.msrb.mxu0 %v643_v15  ;;  %801 = vmatpush.msrb.mxu1 %v691_v21  ;;  %v874_v15 = vld [vmem:[#allocation13 + $0xc8] sm:$0xff]  ;;  %v701_v21 = vld [vmem:[#allocation11 + $0x220] sm:$0xff] }
  0xa7   : > { %814 = vmatpush.msrb.mxu2 %v665_v45 }
  0xa8   : > { %782 = vmatpush.msrb.mxu0 %v640_v19  ;;  %802 = vmatpush.msrb.mxu1 %v688_v27  ;;  %v871_v19 = vld [vmem:[#allocation13 + $0xb0] sm:$0xff]  ;;  %v865_v27 = vld [vmem:[#allocation13 + $0x80] sm:$0xff] }
  0xa9   : > { %815 = vmatpush.msrb.mxu2 %v662_v49 }
  0xaa   : > { %783 = vmatpush.msrb.mxu0 %v637_v23  ;;  %803 = vmatpush.msrb.mxu1 %v685_v31  ;;  %v868_v23 = vld [vmem:[#allocation13 + $0x98] sm:$0xff]  ;;  %v862_v31 = vld [vmem:[#allocation13 + $0x68] sm:$0xff] }
  0xab   : > { %816 = vmatpush.msrb.mxu2 %v659_v53  ;;  %v875_v53 = vld [vmem:[#allocation13 + $0xd0] sm:$0xff] }
  0xac   : > { %784 = vmatpush.msrb.mxu0 %v634_v29  ;;  %804 = vmatpush.msrb.mxu1 %v682_v36  ;;  %v695_v29 = vld [vmem:[#allocation11 + $0x1f0] sm:$0xff]  ;;  %v689_v36 = vld [vmem:[#allocation11 + $0x1c0] sm:$0xff] }
  0xad   : > { %817 = vmatpush.msrb.mxu2 %v656_v57  ;;  %v863_v57 = vld [vmem:[#allocation13 + $0x70] sm:$0xff] }
  0xae   : > { %897 = vmatpush.msra.mxu0 %v894_v34  ;;  %917 = vmatpush.msra.mxu1 %v895_v40  ;;  %v855_v34 = vld [vmem:[#allocation13 + $0x30] sm:$0xff]  ;;  %v849_v40 = vld [vmem:[#allocation13] sm:$0xff] }
  0xaf   : > { %818 = vmatpush.msrb.mxu2 %v653_v61  ;;  %v851_v61 = vld [vmem:[#allocation13 + $0x10] sm:$0xff] }
  0xb0   : > { %898 = vmatpush.msra.mxu0 %v891_v38  ;;  %918 = vmatpush.msra.mxu1 %v892_v44  ;;  %v856_v38 = vld [vmem:[#allocation13 + $0x38] sm:$0xff] }
  0xb1   : > { %819 = vmatpush.msrb.mxu2 %v650_v1  ;;  %v896_v44 = vld [vmem:[#allocation13 + $0x178] sm:$0xff] }
  0xb2   : > { %899 = vmatpush.msra.mxu0 %v888_v42  ;;  %919 = vmatpush.msra.mxu1 %v889_v48  ;;  %v683_v42 = vld [vmem:[#allocation11 + $0x190] sm:$0xff] }
  0xb3   : > { %820 = vmatpush.msrb.mxu2 %v647_v3  ;;  %v887_v48 = vld [vmem:[#allocation13 + $0x130] sm:$0xff] }
  0xb4   : > { %900 = vmatpush.msra.mxu0 %v885_v46  ;;  %920 = vmatpush.msra.mxu1 %v886_v52  ;;  %v893_v46 = vld [vmem:[#allocation13 + $0x160] sm:$0xff]  ;;  %v878_v52 = vld [vmem:[#allocation13 + $0xe8] sm:$0xff] }
  0xb6   : > { %901 = vmatpush.msra.mxu0 %v882_v50  ;;  %921 = vmatpush.msra.mxu1 %v883_v56  ;;  %v884_v50 = vld [vmem:[#allocation13 + $0x118] sm:$0xff]  ;;  %v866_v56 = vld [vmem:[#allocation13 + $0x88] sm:$0xff] }
  0xb8   : > { %902 = vmatpush.msra.mxu0 %v879_v54  ;;  %922 = vmatpush.msra.mxu1 %v880_v60  ;;  %v872_v54 = vld [vmem:[#allocation13 + $0xb8] sm:$0xff]  ;;  %v854_v60 = vld [vmem:[#allocation13 + $0x28] sm:$0xff] }
  0xba   : > { %903 = vmatpush.msra.mxu0 %v876_v58  ;;  %923 = vmatpush.msra.mxu1 %v877_v0  ;;  %v860_v58 = vld [vmem:[#allocation13 + $0x58] sm:$0xff]  ;;  %v497_v0 = vld [vmem:[%s1916_s6] sm:$0x7] }
  0xbc   : > { %924 = vmatpush.msra.mxu1 %v874_v15 }
  0xbe   : > { %925 = vmatpush.msra.mxu1 %v871_v19 }
  0xc0   : > { %926 = vmatpush.msra.mxu1 %v868_v23 }
  0xc2   : > { %927 = vmatpush.msra.mxu1 %v865_v27 }
  0xc4   : > { %928 = vmatpush.msra.mxu1 %v862_v31 }
 0x10a   : > { %v563_v4 = vpop.f32.mrf.mxu0  ;;  %v583_v5 = vpop.f32.mrf.mxu1 }
 0x10b   : > { %v584_v7 = vadd.f32 %v583_v5, %v494_v62  ;;  %v564_v8 = vadd.f32 %v563_v4, %v493_v63  ;;  %v873_v62 = vld [vmem:[#allocation13 + $0xc0] sm:$0xff]  ;;  %v690_v63 = vld [vmem:[#allocation11 + $0x1c8] sm:$0xff]  ;;  %v684_v4 = vld [vmem:[#allocation11 + $0x198] sm:$0xff] }
 0x10c   : > { %904 = vmatpush.msra.mxu0 %v873_v62  ;;  %v681_v5 = vld [vmem:[#allocation11 + $0x180] sm:$0xff] }
 0x10d   : > { %605 = vmatpush.msra.mxu3 %v564_v8  ;;  %v722_v8 = vld [vmem:[#allocation11 + $0x2c8] sm:$0xff] }
 0x10e   : > { %1193 = vmatmul.msk.f32.vlgmr.msra.gmra.mxu3 %vm586_vm0, %v489_v9  ;;  %v719_v9 = vld [vmem:[#allocation11 + $0x2b0] sm:$0xff]  ;;  %905 = vmatpush.msra.mxu0 %v870_v14 }
 0x10f   : > { %628 = vmatpush.msrb.mxu3 %v584_v7  ;;  %v725_v7 = vld [vmem:[#allocation11 + $0x2e0] sm:$0xff] }
 0x110   : > { %906 = vmatpush.msra.mxu0 %v867_v18 }
 0x111   : > { %749 = vmatpush.msra.mxu3 %v726_v12  ;;  %v710_v12 = vld [vmem:[#allocation11 + $0x268] sm:$0xff] }
 0x112   : > { %907 = vmatpush.msra.mxu0 %v864_v22 }
 0x113   : > { %750 = vmatpush.msra.mxu3 %v723_v16  ;;  %v644_v16 = vld [vmem:[#allocation11 + $0x58] sm:$0xff] }
 0x114   : > { %821 = vmatpush.msrb.mxu2 %v644_v16 }
 0x115   : > { %751 = vmatpush.msra.mxu3 %v720_v20  ;;  %v641_v20 = vld [vmem:[#allocation11 + $0x40] sm:$0xff] }
 0x116   : > { %1194 = vmatmul.msk.f32.vlgmr.msrb.gmra.mxu3 %vm586_vm0, %v490_v24  ;;  %822 = vmatpush.msrb.mxu2 %v641_v20  ;;  %v638_v24 = vld [vmem:[#allocation11 + $0x28] sm:$0xff] }
 0x117   : > { %752 = vmatpush.msra.mxu3 %v717_v26  ;;  %v861_v26 = vld [vmem:[#allocation13 + $0x60] sm:$0xff] }
 0x118   : > { %823 = vmatpush.msrb.mxu2 %v638_v24  ;;  %908 = vmatpush.msra.mxu0 %v861_v26 }
 0x119   : > { %753 = vmatpush.msra.mxu3 %v714_v30  ;;  %v858_v30 = vld [vmem:[#allocation13 + $0x48] sm:$0xff] }
 0x11a   : > { %824 = vmatpush.msrb.mxu2 %v635_v28  ;;  %909 = vmatpush.msra.mxu0 %v858_v30 }
 0x11b   : > { %754 = vmatpush.msra.mxu3 %v711_v35  ;;  %v859_v35 = vld [vmem:[#allocation13 + $0x50] sm:$0xff] }
 0x11c   : > { %910 = vmatpush.msra.mxu0 %v855_v34  ;;  %929 = vmatpush.msra.mxu1 %v859_v35  ;;  %v501_v34 = vperm.slane %v497_v0, 2 }
 0x11d   : > { %755 = vmatpush.msra.mxu3 %v708_v39  ;;  %v686_v39 = vld [vmem:[#allocation11 + $0x1a8] sm:$0xff] }
 0x11e   : > { %911 = vmatpush.msra.mxu0 %v852_v37  ;;  %930 = vmatpush.msra.mxu1 %v856_v38 }
 0x11f   : > { %756 = vmatpush.msra.mxu3 %v705_v43  ;;  %v850_v43 = vld [vmem:[#allocation13 + $0x8] sm:$0xff] }
 0x120   : > { %912 = vmatpush.msra.mxu0 %v849_v40  ;;  %931 = vmatpush.msra.mxu1 %v853_v41 }
 0x121   : > { %757 = vmatpush.msra.mxu3 %v702_v47  ;;  %v890_v47 = vld [vmem:[#allocation13 + $0x148] sm:$0xff] }
 0x122   : > { %932 = vmatpush.msra.mxu1 %v850_v43 }
 0x123   : > { %758 = vmatpush.msra.mxu3 %v699_v51  ;;  %v881_v51 = vld [vmem:[#allocation13 + $0x100] sm:$0xff] }
 0x125   : > { %759 = vmatpush.msra.mxu3 %v696_v55  ;;  %v869_v55 = vld [vmem:[#allocation13 + $0xa0] sm:$0xff] }
 0x127   : > { %760 = vmatpush.msra.mxu3 %v693_v59  ;;  %v857_v59 = vld [vmem:[#allocation13 + $0x40] sm:$0xff] }
 0x129   : > { %761 = vmatpush.msra.mxu3 %v690_v63  ;;  %v505_v63 = vld [vmem:[%s1918_s8] sm:$0x7] }
 0x12a   : > { %v507_v3 = vperm.slane %v505_v63, 0  ;;  %v509_v28 = vperm.slane %v505_v63, 2 }
 0x12b   : > { %762 = vmatpush.msra.mxu3 %v687_v2  ;;  %v499_v2 = vperm.slane %v497_v0, 0 }
 0x12d   : > { %763 = vmatpush.msra.mxu3 %v684_v4 }
 0x12f   : > { %764 = vmatpush.msra.mxu3 %v681_v5 }
 0x131   : > { %829 = vmatpush.msrb.mxu3 %v728_v6  ;;  %v500_v6 = vperm.slane %v497_v0, 1 }
 0x133   : > { %830 = vmatpush.msrb.mxu3 %v725_v7 }
 0x135   : > { %831 = vmatpush.msrb.mxu3 %v722_v8 }
 0x137   : > { %832 = vmatpush.msrb.mxu3 %v719_v9  ;;  %v508_v9 = vperm.slane %v505_v63, 1 }
 0x139   : > { %833 = vmatpush.msrb.mxu3 %v716_v10 }
 0x13b   : > { %834 = vmatpush.msrb.mxu3 %v713_v11 }
 0x13d   : > { %835 = vmatpush.msrb.mxu3 %v710_v12 }
 0x13f   : > { %836 = vmatpush.msrb.mxu3 %v707_v13 }
 0x141   : > { %837 = vmatpush.msrb.mxu3 %v704_v17 }
 0x143   : > { %838 = vmatpush.msrb.mxu3 %v701_v21 }
 0x145   : > { %839 = vmatpush.msrb.mxu3 %v698_v25 }
 0x147   : > { %840 = vmatpush.msrb.mxu3 %v695_v29 }
 0x149   : > { %841 = vmatpush.msrb.mxu3 %v692_v33 }
 0x14b   : > { %842 = vmatpush.msrb.mxu3 %v689_v36 }
 0x14d   : > { %843 = vmatpush.msrb.mxu3 %v686_v39 }
 0x14f   : > { %844 = vmatpush.msrb.mxu3 %v683_v42 }
 0x191   : > { %v607_v45 = vpop.f32.mrf.mxu3 }
 0x192   : > { %745 = vmatmul.f32.vlgmr.msra.gmra.mxu2 %v607_v45  ;;  %785 = vmatmul.f32.vlgmr.msrb.gmra.mxu0 %v607_v45 }
 0x193   : > { %937 = vmatpush.msra.mxu2 %v896_v44 }
 0x195   : > { %938 = vmatpush.msra.mxu2 %v893_v46 }
 0x197   : > { %939 = vmatpush.msra.mxu2 %v890_v47 }
 0x199   : > { %v630_v49 = vpop.f32.mrf.mxu3  ;;  %940 = vmatpush.msra.mxu2 %v887_v48 }
 0x19a   : > { %765 = vmatmul.f32.vlgmr.msra.gmra.mxu3 %v630_v49  ;;  %805 = vmatmul.f32.vlgmr.msrb.gmra.mxu1 %v630_v49 }
 0x19b   : > { %825 = vmatmul.f32.vlgmr.msrb.gmra.mxu2 %v607_v45  ;;  %913 = vmatmul.f32.vlgmr.msra.gmra.mxu0 %v1856_v32 }
 0x19c   : > { %941 = vmatpush.msra.mxu2 %v884_v50 }
 0x19e   : > { %942 = vmatpush.msra.mxu2 %v881_v51 }
 0x1a0   : > { %943 = vmatpush.msra.mxu2 %v878_v52 }
 0x1a2   : > { %845 = vmatmul.f32.vlgmr.msrb.gmra.mxu3 %v630_v49  ;;  %933 = vmatmul.f32.vlgmr.msra.gmra.mxu1 %v1856_v32 }
 0x1a3   : > { %944 = vmatpush.msra.mxu2 %v875_v53 }
 0x1a5   : > { %945 = vmatpush.msra.mxu2 %v872_v54 }
 0x1a7   : > { %946 = vmatpush.msra.mxu2 %v869_v55 }
 0x1a9   : > { %947 = vmatpush.msra.mxu2 %v866_v56 }
 0x1ab   : > { %948 = vmatpush.msra.mxu2 %v863_v57 }
 0x1ad   : > { %949 = vmatpush.msra.mxu2 %v860_v58 }
 0x1af   : > { %950 = vmatpush.msra.mxu2 %v857_v59 }
 0x1b1   : > { %951 = vmatpush.msra.mxu2 %v854_v60 }
 0x1b3   : > { %952 = vmatpush.msra.mxu2 %v851_v61 }
 0x1b4   : > { %953 = vmatmul.f32.vlgmr.msra.gmra.mxu2 %v1856_v32 }
 0x20f   : > { %v786_v62 = vpop.f32.mrf.mxu0 }
 0x210   : > { %v787_v11 = vadd.f32 %v786_v62, %v500_v6 }
 0x215   : > { %v746_v4 = vpop.f32.mrf.mxu2 }
 0x216   : > { %v747_v7 = vadd.f32 %v746_v4, %v499_v2 }
 0x217   : > { %v806_v1 = vpop.f32.mrf.mxu1 }
 0x218   : > { %v914_v5 = vpop.f32.mrf.mxu0  ;;  %v807_v14 = vadd.f32 %v806_v1, %v787_v11 }
 0x219   : > { %v915_v8 = vadd.f32 %v914_v5, %v507_v3 }
 0x21d   : > { %v766_v10 = vpop.f32.mrf.mxu3 }
 0x21e   : > { %v767_v12 = vadd.f32 %v766_v10, %v747_v7  ;;  %v826_v24 = vpop.f32.mrf.mxu2 }
 0x21f   : > { %v934_v13 = vpop.f32.mrf.mxu1  ;;  %v827_v42 = vadd.f32 %v826_v24, %v501_v34 }
 0x220   : > { %v957_v15 = vadd.f32 %v915_v8, %v767_v12  ;;  %v935_v16 = vadd.f32 %v934_v13, %v508_v9 }
 0x222   : > { %v1195_v17 = vmul.f32 -1.442695, %v957_v15  ;;  %v977_v18 = vadd.f32 %v935_v16, %v807_v14 }
 0x224   : > { %1302 = vpow2.f32 %v1195_v17  ;;  %v1196_v19 = vmul.f32 -1.442695, %v977_v18 }
 0x225   : > { %v846_v40 = vpop.f32.mrf.mxu3 }
 0x226   : > { %1304 = vpow2.f32 %v1196_v19  ;;  %v847_v45 = vadd.f32 %v846_v40, %v827_v42 }
 0x22a   : > { %v1303_v20 = vpop.eup %1302 }
 0x22b   : > { %v961_v21 = vadd.f32 1.0, %v1303_v20 }
 0x22c   : > { %v1305_v22 = vpop.eup %1304 }
 0x22d   : > { %1306 = vrcp.f32 %v961_v21  ;;  %v981_v23 = vadd.f32 1.0, %v1305_v22  ;;  %v973_v33 = vand.u32 2147483648, %v961_v21  ;;  %v971_v36 = vand.u32 2147483647, %v961_v21 }
 0x22e   : > { %vm967_vm2 = vweird.f32 %v961_v21 }
 0x22f   : > { %1308 = vrcp.f32 %v981_v23  ;;  %v974_v41 = vor.u32 1.1754944e-38, %v973_v33  ;;  %vm972_vm4 = vcmp.eq.f32.partialorder %v971_v36, 8.507059e+37  ;;  %v993_v50 = vand.u32 2147483648, %v981_v23 }
 0x230   : > { %vm987_vm6 = vweird.f32 %v981_v23  ;;  %v991_v51 = vand.u32 2147483647, %v981_v23 }
 0x231   : > { %v994_v54 = vor.u32 1.1754944e-38, %v993_v50 }
 0x232   : > { %vm992_vm8 = vcmp.eq.f32.partialorder %v991_v51, 8.507059e+37 }
 0x233   : > { %v1307_v25 = vpop.eup %1306 }
 0x234   : > { %v963_v26 = vmul.f32 %v1307_v25, %v961_v21  ;;  %vm968_vm1 = vweird.f32 %v1307_v25 }
 0x235   : > { %v1309_v27 = vpop.eup %1308  ;;  %vm969_vm3 = vmor %vm967_vm2, %vm968_vm1 }
 0x236   : > { %v964_v29 = vsub.f32 1.0, %v963_v26  ;;  %v983_v30 = vmul.f32 %v1309_v27, %v981_v23  ;;  %vm988_vm5 = vweird.f32 %v1309_v27 }
 0x237   : > { %v954_v31 = vpop.f32.mrf.mxu2  ;;  %vm989_vm7 = vmor %vm987_vm6, %vm988_vm5 }
 0x238   : > { %v965_v35 = vmul.f32 %v1307_v25, %v964_v29  ;;  %v955_v37 = vadd.f32 %v954_v31, %v509_v28  ;;  %v984_v39 = vsub.f32 1.0, %v983_v30 }
 0x23a   : > { %v966_v38 = vadd.f32 %v1307_v25, %v965_v35  ;;  %v985_v47 = vmul.f32 %v1309_v27, %v984_v39 }
 0x23c   : > { %v970_v43 = vsel %vm969_vm3, %v1307_v25, %v966_v38  ;;  %v986_v49 = vadd.f32 %v1309_v27, %v985_v47 }
 0x23d   : > { %v975_v44 = vsel %vm972_vm4, %v974_v41, %v970_v43 }
 0x23e   : > { %v997_v46 = vmul.f32 %v975_v44, %v955_v37  ;;  %v990_v52 = vsel %vm989_vm7, %v1309_v27, %v986_v49 }
 0x23f   : > { %v995_v56 = vsel %vm992_vm8, %v994_v54, %v990_v52 }
 0x240   : > { %v998_v48 = vadd.f32 %v997_v46, %v847_v45 }
 0x242   : > { %1310 = vtanh.f32 %v998_v48 }
 0x248   : > { %v1311_v53 = vpop.eup %1310 }
 0x249   : > { %v1000_v55 = vsub.f32 %v1856_v32, %v1311_v53 }
 0x24b   : > { %v1001_v57 = vmul.f32 %v1000_v55, %v995_v56 }
 0x24d   : > { %v1002_v58 = vadd.f32 %v1311_v53, %v1001_v57 }
 0x24f   : > { %1003 = vst [vmem:[%s488_s23] sm:$0xff] %v1002_v58 }
 0x250   : > { %1549 = shalt.err (!%p1546_p11)
}
 0x251   : > { %1223 = dma.vmem_to_hbm [thread:$0]  (%p1736_p4), %s1018_s20, 128, %s1020_s30, %s1005_s16  }
 0x252 PF: > { %s1955_s25 = sld [smem:[#allocation20_spill]] }
 0x253   : > { %s1957_s4 = sld [smem:[#allocation21_spill]] }
 0x258   : > { %s1031_s19 = sand.u32 1, %s1955_s25  }
 0x259   : > { %p1958_p13 = scmp.ge.s32.totalorder %s1957_s4, 2  ;;  %s1032_s24 = scalar_lea.sflag [#allocation4], %s1031_s19 }
 0x25b   : > { %p1249_p3 = pnand %p1958_p13, %p1740_p5 }
 0x25d   : > { %p1250_p7 = pneg %p1249_p3 }
 0x25f   : > { %1583 = dma.done.wait (%p1250_p7), %s1032_s24, 128  }
 0x260   : > { %1585 = vsyncadd (%p1250_p7), %s1032_s24, 4294967168  ;;  %s1959_s12 = sld [smem:[#allocation22_spill]]  ;;  %s1961_s30 = smov %s1592_s10 }
 0x261   : > { %s1960_s13 = sld [smem:[#allocation23_spill]]  ;;  %s1962_s10 = smov %s1596_s11 }
 0x266   : > { %p27_p9 = scmp.ge.s32.totalorder %s1959_s12, 4  }
 0x267   : > { %s1963_s11 = smov %s1960_s13 }
 0x268   :  { %29 = sbr.rel (!%p27_p9) target bundleno = 14 (0xe), region = 141 }
 0x26d   :  { %1038 = vsyncpa [#allocation3], 1 }
 0x26e   :  { %1040 = vsyncpa [#allocation3 + $0x1], 1 }
 0x26f   :  { %1041 = vsyncpa [#allocation6], 1 }
 0x270   :  { %1043 = vsyncpa [#allocation6 + $0x1], 1 }
 0x271   :  { %1044 = vsyncpa [#allocation9], 1 }
 0x272   :  { %1045 = vsyncpa [#allocation12], 1 }
 0x273   :  { %1046 = vsyncpa [#allocation4], 1 }
 0x274   :  { %1048 = vsyncpa [#allocation4 + $0x1], 1 }

</bundles_post_ra>
